<compile_context>
chip_gen: v5e
topology: v5e:2x2
jax: 0.10.0
libtpu: 0.0.40
codegen_flags: <defaults>
</compile_context>

<pallas_src>
import functools

import jax
import jax.numpy as jnp
import numpy as np
from jax.experimental import pallas as pl
from jax.experimental.pallas import tpu as pltpu

HID = 32
NUM_LAYERS = 2
BETA = 1.0          # GENConv inverse temperature for the softmax aggregator
GEN_EPS = 1e-7      # GENConv message epsilon
BN_EPS = 1e-5       # BatchNorm1d epsilon
DROPOUT = 0.0       # dropout prob (identity at p=0)
# TODO(synk): dropout with p > 0 would use pltpu.prng_seed / pltpu.prng_random_bits.

# Message-table dtype stays bf16 on ALL generations: the cast is a once-per-layer O(N*H)
# op and bf16 keeps the dominant aggregation matmul on the native bf16 MXU path.
MSG_DTYPE = jnp.bfloat16
_MIB = 1024 * 1024


def _round_up(v, m):
    return ((v + m - 1) // m) * m


def _physical_vmem_bytes():
    """Per-core VMEM capacity (128 MiB v5e/v6e, 64 MiB v7x); conservative fallback."""
    try:
        info = pltpu.get_tpu_info()
        v = int(getattr(info, "vmem_capacity_bytes", 0) or 0)
        if v > 0:
            return v
    except Exception:
        pass
    return 64 * _MIB          # assume the smallest (v7x-sized) VMEM if the query fails


def _plan(n, feat_dim):
    """Per-generation tiling plan: n_pad, tile_n, prologue chunk, VMEM limit, residency."""
    phys = _physical_vmem_bytes()
    vmem_limit = int(phys * 0.78)          # headroom for compiler-managed temporaries

    def fixed_bytes(n_pad, tile_n):
        hv = n_pad * HID * 4                      # full-graph residual state (f32)
        msgs = n_pad * 2 * HID * 2                # full-graph message table (bf16)
        xb = 2 * n_pad * max(feat_dim, 8) * 4     # x block (constant index, 2 buffers)
        outb = 2 * tile_n * 128 * 4               # output block (f32, 2 buffers)
        misc = 2 * _MIB                           # weights + chunked prologue temporaries
        return hv + msgs + xb + outb + misc

    # 1) keep the adjacency fully VMEM-resident (DMA'd once for the whole kernel) if it fits.
    n_pad = _round_up(n, 8) if n <= 256 else _round_up(n, 256)
    adj_bytes = 2 * n_pad * n_pad * 2             # bf16; conservatively count 2 buffers
    if adj_bytes + fixed_bytes(n_pad, n_pad) <= vmem_limit:
        return dict(n_pad=n_pad, tile_n=n_pad, pro_chunk=min(n_pad, 256),
                    vmem_limit=vmem_limit, resident=True)

    # 2) otherwise stream adjacency row tiles; pick the largest tile this generation's VMEM
    #    allows (128-MiB parts try 1024/512/256; 64-MiB v7x stays at 256).
    candidates = (1024, 512, 256) if phys > 96 * _MIB else (256,)
    for t in candidates:
        n_pad = _round_up(n, t)
        if 2 * t * n_pad * 2 + fixed_bytes(n_pad, t) <= vmem_limit:
            return dict(n_pad=n_pad, tile_n=t, pro_chunk=256,
                        vmem_limit=vmem_limit, resident=False)
    t = 128                                        # last resort for very large graphs
    return dict(n_pad=_round_up(n, t), tile_n=t, pro_chunk=128,
                vmem_limit=vmem_limit, resident=False)


def _avg_pool_matrix(hid):
    # AvgPool1d(kernel_size=2, stride=2) over the feature axis as a constant [H, H/2] matrix.
    return jnp.where(
        (jnp.arange(hid)[:, None] // 2) == jnp.arange(hid // 2)[None, :],
        0.5, 0.0).astype(jnp.float32)


def prepare_adjacency(adj, node_feat_dim):
    """Pad the dense 0/1 adjacency to the kernel tiling and cast to bf16 (exact for 0/1).

    This is a full HBM pass over the only O(N^2) operand: call it ONCE per graph and reuse
    the result across forward calls instead of paying it on every call."""
    n = adj.shape[0]
    cfg = _plan(n, node_feat_dim)
    p = cfg["n_pad"] - n
    return jnp.pad(adj, ((0, p), (0, p))).astype(jnp.bfloat16)


def _deeper_gcn_kernel(x_ref, adj_ref, w_enc_ref, b_enc_ref,
                       bn_w_ref, bn_b_ref, mlp_w_ref, mlp_b_ref,
                       w_fused_ref, b_out_ref,
                       out_ref,
                       hv_scr, msgs_scr, bn_scale_scr, bn_shift_scr,
                       sum_scr, sumsq_scr,
                       *, n_real, tile_n, hid, num_layers, pro_chunk):
    layer = pl.program_id(0)
    tile = pl.program_id(1)
    n_pad = hv_scr.shape[0]
    n_chunks = n_pad // pro_chunk
    inv_n = 1.0 / float(n_real)

    # One-time node encoder hv = x @ W_enc + b_enc (chunked) + initial BN-stat accumulation.
    @pl.when(jnp.logical_and(layer == 0, tile == 0))
    def _():
        sum_scr[...] = jnp.zeros_like(sum_scr)
        sumsq_scr[...] = jnp.zeros_like(sumsq_scr)

        @pl.loop(0, n_chunks)
        def _(c):
            r0 = pl.multiple_of(c * pro_chunk, pro_chunk)
            hv_c = (jnp.dot(x_ref[pl.ds(r0, pro_chunk), :], w_enc_ref[...],
                            preferred_element_type=jnp.float32) + b_enc_ref[...])
            hv_scr[pl.ds(r0, pro_chunk), :] = hv_c
            valid = (jax.lax.broadcasted_iota(jnp.int32, (pro_chunk, 1), 0) + r0) < n_real
            hv_m = jnp.where(valid, hv_c, 0.0)            # exclude padded rows from BN stats
            sum_scr[...] += jnp.sum(hv_m, axis=0, keepdims=True)
            sumsq_scr[...] += jnp.sum(hv_m * hv_m, axis=0, keepdims=True)

    # Per-layer prologue (first row tile only): finalize the training-mode BatchNorm batch
    # stats (folded into one affine) and build the full-graph softmax-aggregation message
    # table msgs = [e*m | e] in bf16, chunked so temporaries stay a few hundred KiB.
    @pl.when(tile == 0)
    def _():
        mean = sum_scr[...] * inv_n
        var = jnp.maximum(sumsq_scr[...] * inv_n - mean * mean, 0.0)  # biased (training) var
        inv_std = jax.lax.rsqrt(var + BN_EPS)
        scale = inv_std * bn_w_ref[...]                               # fold BN gamma
        shift = bn_b_ref[...] - mean * scale                          # fold BN beta
        bn_scale_scr[...] = scale
        bn_shift_scr[...] = shift
        sum_scr[...] = jnp.zeros_like(sum_scr)                        # restart accumulation
        sumsq_scr[...] = jnp.zeros_like(sumsq_scr)                    # for the next layer

        @pl.loop(0, n_chunks)
        def _(c):
            r0 = pl.multiple_of(c * pro_chunk, pro_chunk)
            hv_c = hv_scr[pl.ds(r0, pro_chunk), :]
            hn_c = jnp.maximum(hv_c * scale + shift, 0.0)             # ReLU(BN(hv))
            m_c = hn_c + GEN_EPS                                      # hn >= 0: no 2nd ReLU
            # The usual z - max(z) softmax shift is dropped: it cancels exactly in num/den
            # and post-BN ReLU'd activations are O(1), so exp cannot overflow bf16.
            e_c = jnp.exp(BETA * m_c)
            msgs_scr[pl.ds(r0, pro_chunk), pl.ds(0, hid)] = (e_c * m_c).astype(msgs_scr.dtype)
            msgs_scr[pl.ds(r0, pro_chunk), pl.ds(hid, hid)] = e_c.astype(msgs_scr.dtype)

    # Row-tile body: fused softmax aggregation + GENConv MLP + residual for tile_n rows.
    row0 = pl.multiple_of(tile * tile_n, tile_n)
    hv_rows = hv_scr[pl.ds(row0, tile_n), :]                          # [T, H]
    hn_rows = jnp.maximum(hv_rows * bn_scale_scr[...] + bn_shift_scr[...], 0.0)

    # One matmul for numerator AND denominator: [T, N_pad] @ [N_pad, 2H], f32 accumulate.
    # (rhs is only 2H = 64 lanes wide; acceptable while adj-HBM-bound — stack graphs along
    #  lanes to widen the rhs before other tuning if this ever becomes compute-bound.)
    agg2 = jnp.dot(adj_ref[...], msgs_scr[...], preferred_element_type=jnp.float32)
    num = agg2[:, :hid]
    den = agg2[:, hid:]
    inv_den = pl.reciprocal(den, approx=True)                         # EUP, off the VALU
    agg = jnp.where(den > 0.0, num * inv_den, 0.0)                    # isolated/padded rows -> 0

    feats = hn_rows + agg
    conv = (jnp.dot(feats, mlp_w_ref[...], preferred_element_type=jnp.float32)
            + mlp_b_ref[...])
    hv_new = conv + hv_rows                                           # residual connection
    hv_scr[pl.ds(row0, tile_n), :] = hv_new

    # Accumulate the NEXT layer's BatchNorm statistics while the adj-bound tiles stream.
    @pl.when(layer + 1 < num_layers)
    def _():
        valid = (jax.lax.broadcasted_iota(jnp.int32, (tile_n, 1), 0) + row0) < n_real
        hv_m = jnp.where(valid, hv_new, 0.0)
        sum_scr[...] += jnp.sum(hv_m, axis=0, keepdims=True)
        sumsq_scr[...] += jnp.sum(hv_m * hv_m, axis=0, keepdims=True)

    # Fused AvgPool1d(2,2) + output Linear, lane-dense store. Computed every layer so the
    # per-step output auto-writeback never carries stale VMEM; only the last (outer,
    # sequential) layer's values survive in HBM.
    out_ref[...] = (jnp.dot(hv_new, w_fused_ref[...],
                            preferred_element_type=jnp.float32) + b_out_ref[...])


def deeper_gcn_forward(x, adj, params):
    n, f = x.shape
    hid = params["w_enc"].shape[1]
    out_dim = params["w_out"].shape[1]
    num_layers = params["mlp_w"].shape[0]

    cfg = _plan(n, f)
    n_pad, tile_n, pro_chunk = cfg["n_pad"], cfg["tile_n"], cfg["pro_chunk"]

    # Fuse AvgPool1d(2,2) + output Linear into one [H, out_dim] weight and zero-pad the
    # output lanes to 128 so kernel stores are dense vst (not masked partial stores).
    out_pad = _round_up(out_dim, 128)
    w_fused = _avg_pool_matrix(hid) @ params["w_out"]
    w_fused = jnp.pad(w_fused, ((0, 0), (0, out_pad - out_dim)))
    b_out = jnp.pad(params["b_out"], ((0, 0), (0, out_pad - out_dim)))

    # Prefer an adjacency already processed by prepare_adjacency(); only fall back to the
    # (expensive, extra HBM pass) in-call pad+cast when handed a raw f32 square matrix.
    if adj.dtype == jnp.bfloat16 and adj.shape == (n_pad, n_pad):
        adj_p = adj
    else:
        adj_p = jnp.pad(adj, ((0, n_pad - n), (0, n_pad - n))).astype(jnp.bfloat16)

    x_p = jnp.pad(x.astype(jnp.float32), ((0, n_pad - n), (0, 0)))

    kernel = functools.partial(_deeper_gcn_kernel, n_real=n, tile_n=tile_n,
                               hid=hid, num_layers=num_layers, pro_chunk=pro_chunk)

    out_padded = pl.pallas_call(
        kernel,
        out_shape=jax.ShapeDtypeStruct((n_pad, out_pad), jnp.float32),
        grid_spec=pltpu.PrefetchScalarGridSpec(
            num_scalar_prefetch=0,
            grid=(num_layers, n_pad // tile_n),
            in_specs=[
                pl.BlockSpec((n_pad, f), lambda l, i: (0, 0)),            # x (VMEM resident)
                # adj: streamed row tiles; when tile_n == n_pad (resident plan) the block
                # index is constant, so the whole adjacency is DMA'd once for ALL layers.
                pl.BlockSpec((tile_n, n_pad), lambda l, i: (i, 0)),
                pl.BlockSpec((f, hid), lambda l, i: (0, 0)),              # w_enc (resident)
                pl.BlockSpec((1, hid), lambda l, i: (0, 0)),              # b_enc (resident)
                pl.BlockSpec((None, 1, hid), lambda l, i: (l, 0, 0)),     # BN gamma (per layer)
                pl.BlockSpec((None, 1, hid), lambda l, i: (l, 0, 0)),     # BN beta  (per layer)
                pl.BlockSpec((None, hid, hid), lambda l, i: (l, 0, 0)),   # GENConv MLP W
                pl.BlockSpec((None, 1, hid), lambda l, i: (l, 0, 0)),     # GENConv MLP b
                pl.BlockSpec((hid, out_pad), lambda l, i: (0, 0)),        # fused pool+head W
                pl.BlockSpec((1, out_pad), lambda l, i: (0, 0)),          # padded output bias
            ],
            out_specs=pl.BlockSpec((tile_n, out_pad), lambda l, i: (i, 0)),
            scratch_shapes=[
                pltpu.VMEM((n_pad, hid), jnp.float32),        # hv (full graph residual state)
                pltpu.VMEM((n_pad, 2 * hid), MSG_DTYPE),      # msgs = [e*m | e] (full graph)
                pltpu.VMEM((1, hid), jnp.float32),            # folded BN scale
                pltpu.VMEM((1, hid), jnp.float32),            # folded BN shift
                pltpu.VMEM((1, hid), jnp.float32),            # running sum(hv) for next layer
                pltpu.VMEM((1, hid), jnp.float32),            # running sum(hv^2)
            ]),
        # TODO(synk): v7x dual-TensorCore split (hoist the tile==0 prologue, make the row
        # sweep core-parallel with msgs in VMEM_SHARED) — left single-core here.
        # TODO(synk): fp8 adj on v7x (0/1 exact in e4m3) would halve the dominant HBM stream.
        compiler_params=pltpu.CompilerParams(
            dimension_semantics=("arbitrary", "arbitrary"),
            vmem_limit_bytes=int(cfg["vmem_limit"])),
    )(x_p, adj_p,
      params["w_enc"], params["b_enc"],
      params["bn_w"], params["bn_b"],
      params["mlp_w"], params["mlp_b"],
      w_fused, b_out)
    return out_padded[:n, :out_dim]


def deeper_gcn_reference(x, adj, params):
    """Pure-JAX f32 reference matching the PyTorch forward semantics."""
    hid = params["w_enc"].shape[1]
    hv = x @ params["w_enc"] + params["b_enc"]
    for l in range(params["mlp_w"].shape[0]):
        mean = jnp.mean(hv, axis=0, keepdims=True)
        var = jnp.mean((hv - mean) ** 2, axis=0, keepdims=True)
        hn = (hv - mean) / jnp.sqrt(var + BN_EPS) * params["bn_w"][l] + params["bn_b"][l]
        hn = jnp.maximum(hn, 0.0)
        m = jnp.maximum(hn, 0.0) + GEN_EPS
        e = jnp.exp(BETA * m)
        num = adj @ (e * m)
        den = adj @ e
        agg = jnp.where(den > 0.0, num / den, 0.0)
        hv = (hn + agg) @ params["mlp_w"][l] + params["mlp_b"][l] + hv
    h_g = hv @ _avg_pool_matrix(hid)
    return h_g @ params["w_out"] + params["b_out"]


def init_params(key, node_feat_dim, hid_dim, out_dim, num_layers):
    ks = jax.random.split(key, 6)
    scale = 0.1
    return dict(
        w_enc=jax.random.normal(ks[0], (node_feat_dim, hid_dim), jnp.float32) * scale,
        b_enc=jax.random.normal(ks[1], (1, hid_dim), jnp.float32) * scale,
        bn_w=jnp.ones((num_layers, 1, hid_dim), jnp.float32),    # BatchNorm1d defaults
        bn_b=jnp.zeros((num_layers, 1, hid_dim), jnp.float32),
        mlp_w=jax.random.normal(ks[2], (num_layers, hid_dim, hid_dim), jnp.float32) * scale,
        mlp_b=jax.random.normal(ks[3], (num_layers, 1, hid_dim), jnp.float32) * scale,
        w_out=jax.random.normal(ks[4], (hid_dim // 2, out_dim), jnp.float32) * scale,
        b_out=jax.random.normal(ks[5], (1, out_dim), jnp.float32) * scale,
    )


if __name__ == "__main__":
    N, F, H, O, L = 16, 8, HID, 4, NUM_LAYERS
    key = jax.random.PRNGKey(0)
    k_x, k_a, k_p = jax.random.split(key, 3)

    x = jax.random.normal(k_x, (N, F), jnp.float32)
    a = (jax.random.uniform(k_a, (N, N)) < 0.3).astype(jnp.float32)
    adj = jnp.maximum(a, a.T)
    adj = jnp.maximum(adj, jnp.eye(N, dtype=jnp.float32))  # add self-loops

    params = init_params(k_p, F, H, O, L)

    # Hoisted out of the per-call path: pad + bf16-cast the O(N^2) adjacency exactly once
    # and reuse it across forward calls.
    adj_prepped = prepare_adjacency(adj, node_feat_dim=F)

    out = deeper_gcn_forward(x, adj_prepped, params)
    jax.block_until_ready(out)
    assert out.shape == (N, O)

    ref = deeper_gcn_reference(x, adj, params)
    np.testing.assert_allclose(np.asarray(out), np.asarray(ref), atol=5e-2, rtol=5e-2)
    print("KERNEL_OK")
</pallas_src>

<mosaic_0001>
module attributes {stable_mosaic.version = 11 : i64} {
  func.func @_deeper_gcn_kernel(%arg0: i32, %arg1: i32, %arg2: memref<16x8xf32, #tpu.memory_space<vmem>>, %arg3: memref<16x16xbf16, #tpu.memory_space<vmem>>, %arg4: memref<8x32xf32, #tpu.memory_space<vmem>>, %arg5: memref<1x32xf32, #tpu.memory_space<vmem>>, %arg6: memref<1x1x32xf32, #tpu.memory_space<vmem>>, %arg7: memref<1x1x32xf32, #tpu.memory_space<vmem>>, %arg8: memref<1x32x32xf32, #tpu.memory_space<vmem>>, %arg9: memref<1x1x32xf32, #tpu.memory_space<vmem>>, %arg10: memref<32x128xf32, #tpu.memory_space<vmem>>, %arg11: memref<1x128xf32, #tpu.memory_space<vmem>>, %arg12: memref<16x128xf32, #tpu.memory_space<vmem>>, %arg13: memref<16x32xf32, #tpu.memory_space<vmem>>, %arg14: memref<16x64xbf16, #tpu.memory_space<vmem>>, %arg15: memref<1x32xf32, #tpu.memory_space<vmem>>, %arg16: memref<1x32xf32, #tpu.memory_space<vmem>>, %arg17: memref<1x32xf32, #tpu.memory_space<vmem>>, %arg18: memref<1x32xf32, #tpu.memory_space<vmem>>) attributes {dimension_semantics = [#tpu.dimension_semantics<arbitrary>, #tpu.dimension_semantics<arbitrary>], iteration_bounds = array<i64: 2, 1>, scalar_prefetch = 0 : i64, scratch_operands = 6 : i64, tpu.core_type = #tpu.core_type<tc>, window_params = [{pipeline_mode = #tpu.pipeline_mode<synchronous>, transform_indices = @transform_0, window_bounds = array<i64: 16, 8>}, {transform_indices = @transform_1, window_bounds = array<i64: 16, 16>}, {pipeline_mode = #tpu.pipeline_mode<synchronous>, transform_indices = @transform_2, window_bounds = array<i64: 8, 32>}, {pipeline_mode = #tpu.pipeline_mode<synchronous>, transform_indices = @transform_3, window_bounds = array<i64: 1, 32>}, {transform_indices = @transform_4, window_bounds = array<i64: 1, 1, 32>}, {transform_indices = @transform_5, window_bounds = array<i64: 1, 1, 32>}, {transform_indices = @transform_6, window_bounds = array<i64: 1, 32, 32>}, {transform_indices = @transform_7, window_bounds = array<i64: 1, 1, 32>}, {pipeline_mode = #tpu.pipeline_mode<synchronous>, transform_indices = @transform_8, window_bounds = array<i64: 32, 128>}, {pipeline_mode = #tpu.pipeline_mode<synchronous>, transform_indices = @transform_9, window_bounds = array<i64: 1, 128>}, {transform_indices = @transform_10, window_bounds = array<i64: 16, 128>}]} {
    %c0_i32 = arith.constant 0 : i32
    %0 = arith.cmpi eq, %arg0, %c0_i32 : i32
    %c0_i32_0 = arith.constant 0 : i32
    %1 = arith.cmpi eq, %arg1, %c0_i32_0 : i32
    %2 = arith.andi %0, %1 : i1
    %3 = arith.extui %2 : i1 to i32
    %c0_i32_1 = arith.constant 0 : i32
    %4 = arith.cmpi ne, %3, %c0_i32_1 : i32
    scf.if %4 {
      %cst_31 = arith.constant 0.000000e+00 : f32
      %52 = vector.broadcast %cst_31 : f32 to vector<1x32xf32>
      %c0_32 = arith.constant 0 : index
      %c0_33 = arith.constant 0 : index
      %53 = vector.load %arg17[%c0_32, %c0_33] : memref<1x32xf32, #tpu.memory_space<vmem>>, vector<1x32xf32>
      tpu.vector_store %arg17[%c0_32, %c0_33], %52 {strides = array<i32>} : memref<1x32xf32, #tpu.memory_space<vmem>>, vector<1x32xf32>,
      %cst_34 = arith.constant 0.000000e+00 : f32
      %54 = vector.broadcast %cst_34 : f32 to vector<1x32xf32>
      %c0_35 = arith.constant 0 : index
      %c0_36 = arith.constant 0 : index
      %55 = vector.load %arg18[%c0_35, %c0_36] : memref<1x32xf32, #tpu.memory_space<vmem>>, vector<1x32xf32>
      tpu.vector_store %arg18[%c0_35, %c0_36], %54 {strides = array<i32>} : memref<1x32xf32, #tpu.memory_space<vmem>>, vector<1x32xf32>,
      %c0_i32_37 = arith.constant 0 : i32
      %c1_i32_38 = arith.constant 1 : i32
      %56 = arith.muli %c0_i32_37, %c1_i32_38 : i32
      %c0_i32_39 = arith.constant 0 : i32
      %57 = arith.addi %c0_i32_39, %56 : i32
      %c16_i32_40 = arith.constant 16 : i32
      %58 = arith.muli %57, %c16_i32_40 : i32
      %59 = tpu.assume_multiple %58, 16 : i32
      %60 = arith.index_cast %59 : i32 to index
      %c0_41 = arith.constant 0 : index
      %61 = vector.load %arg2[%60, %c0_41] : memref<16x8xf32, #tpu.memory_space<vmem>>, vector<16x8xf32>
      %c0_42 = arith.constant 0 : index
      %c0_43 = arith.constant 0 : index
      %62 = vector.load %arg4[%c0_42, %c0_43] : memref<8x32xf32, #tpu.memory_space<vmem>>, vector<8x32xf32>
      %cst_44 = arith.constant dense<0.000000e+00> : vector<16x32xf32>
      %63 = tpu.matmul %61, %62, %cst_44 {dimension_numbers = #tpu.dot_dimension_numbers<[1], [0], [0], [1], [0, 0, 1, 1], [], []>} : vector<16x8xf32>, vector<8x32xf32>, vector<16x32xf32> -> vector<16x32xf32>
      %c0_45 = arith.constant 0 : index
      %c0_46 = arith.constant 0 : index
      %64 = vector.load %arg5[%c0_45, %c0_46] : memref<1x32xf32, #tpu.memory_space<vmem>>, vector<1x32xf32>
      %65 = vector.broadcast %64 : vector<1x32xf32> to vector<16x32xf32>
      %66 = arith.addf %63, %65 : vector<16x32xf32>
      %67 = arith.index_cast %59 : i32 to index
      %c0_47 = arith.constant 0 : index
      %68 = vector.load %arg13[%67, %c0_47] : memref<16x32xf32, #tpu.memory_space<vmem>>, vector<16x32xf32>
      tpu.vector_store %arg13[%67, %c0_47], %66 {strides = array<i32>} : memref<16x32xf32, #tpu.memory_space<vmem>>, vector<16x32xf32>,
      %69 = tpu.iota {dimensions = array<i32: 0>} : vector<16x1xi32>
      %70 = vector.broadcast %59 : i32 to vector<16x1xi32>
      %71 = arith.addi %69, %70 : vector<16x1xi32>
      %c16_i32_48 = arith.constant 16 : i32
      %72 = vector.broadcast %c16_i32_48 : i32 to vector<16x1xi32>
      %73 = arith.cmpi slt, %71, %72 : vector<16x1xi32>
      %cst_49 = arith.constant 0.000000e+00 : f32
      %74 = vector.shape_cast %73 : vector<16x1xi1> to vector<16x1xi1>
      %75 = vector.broadcast %74 : vector<16x1xi1> to vector<16x32xi1>
      %76 = vector.broadcast %cst_49 : f32 to vector<16x32xf32>
      %77 = arith.select %75, %66, %76 : vector<16x32xi1>, vector<16x32xf32>
      %c0_50 = arith.constant 0 : index
      %c0_51 = arith.constant 0 : index
      %78 = vector.load %arg17[%c0_50, %c0_51] : memref<1x32xf32, #tpu.memory_space<vmem>>, vector<1x32xf32>
      %cst_52 = arith.constant dense<0.000000e+00> : vector<32xf32>
      %79 = vector.multi_reduction <add>, %77, %cst_52 [0] : vector<16x32xf32> to vector<32xf32>
      %80 = vector.shape_cast %79 : vector<32xf32> to vector<1x32xf32>
      %81 = arith.addf %78, %80 : vector<1x32xf32>
      %c0_53 = arith.constant 0 : index
      %c0_54 = arith.constant 0 : index
      %82 = vector.load %arg17[%c0_53, %c0_54] : memref<1x32xf32, #tpu.memory_space<vmem>>, vector<1x32xf32>
      tpu.vector_store %arg17[%c0_53, %c0_54], %81 {strides = array<i32>} : memref<1x32xf32, #tpu.memory_space<vmem>>, vector<1x32xf32>,
      %c0_55 = arith.constant 0 : index
      %c0_56 = arith.constant 0 : index
      %83 = vector.load %arg18[%c0_55, %c0_56] : memref<1x32xf32, #tpu.memory_space<vmem>>, vector<1x32xf32>
      %84 = arith.mulf %77, %77 : vector<16x32xf32>
      %cst_57 = arith.constant dense<0.000000e+00> : vector<32xf32>
      %85 = vector.multi_reduction <add>, %84, %cst_57 [0] : vector<16x32xf32> to vector<32xf32>
      %86 = vector.shape_cast %85 : vector<32xf32> to vector<1x32xf32>
      %87 = arith.addf %83, %86 : vector<1x32xf32>
      %c0_58 = arith.constant 0 : index
      %c0_59 = arith.constant 0 : index
      %88 = vector.load %arg18[%c0_58, %c0_59] : memref<1x32xf32, #tpu.memory_space<vmem>>, vector<1x32xf32>
      tpu.vector_store %arg18[%c0_58, %c0_59], %87 {strides = array<i32>} : memref<1x32xf32, #tpu.memory_space<vmem>>, vector<1x32xf32>,
      %c1_i32_60 = arith.constant 1 : i32
    } else {
    }
    %c0_i32_2 = arith.constant 0 : i32
    %5 = arith.cmpi eq, %arg1, %c0_i32_2 : i32
    %6 = arith.extui %5 : i1 to i32
    %c0_i32_3 = arith.constant 0 : i32
    %7 = arith.cmpi ne, %6, %c0_i32_3 : i32
    scf.if %7 {
      %c0_31 = arith.constant 0 : index
      %c0_32 = arith.constant 0 : index
      %52 = vector.load %arg17[%c0_31, %c0_32] : memref<1x32xf32, #tpu.memory_space<vmem>>, vector<1x32xf32>
      %cst_33 = arith.constant 6.250000e-02 : f32
      %53 = vector.broadcast %cst_33 : f32 to vector<1x32xf32>
      %54 = arith.mulf %52, %53 : vector<1x32xf32>
      %c0_34 = arith.constant 0 : index
      %c0_35 = arith.constant 0 : index
      %55 = vector.load %arg18[%c0_34, %c0_35] : memref<1x32xf32, #tpu.memory_space<vmem>>, vector<1x32xf32>
      %cst_36 = arith.constant 6.250000e-02 : f32
      %56 = vector.broadcast %cst_36 : f32 to vector<1x32xf32>
      %57 = arith.mulf %55, %56 : vector<1x32xf32>
      %58 = arith.mulf %54, %54 : vector<1x32xf32>
      %59 = arith.subf %57, %58 : vector<1x32xf32>
      %cst_37 = arith.constant 0.000000e+00 : f32
      %60 = vector.broadcast %cst_37 : f32 to vector<1x32xf32>
      %61 = arith.maximumf %59, %60 : vector<1x32xf32>
      %cst_38 = arith.constant 9.99999974E-6 : f32
      %62 = vector.broadcast %cst_38 : f32 to vector<1x32xf32>
      %63 = arith.addf %61, %62 : vector<1x32xf32>
      %64 = math.rsqrt %63 : vector<1x32xf32>
      %c0_39 = arith.constant 0 : index
      %c0_40 = arith.constant 0 : index
      %c0_41 = arith.constant 0 : index
      %65 = vector.load %arg6[%c0_39, %c0_40, %c0_41] : memref<1x1x32xf32, #tpu.memory_space<vmem>>, vector<1x1x32xf32>
      %66 = vector.shape_cast %65 : vector<1x1x32xf32> to vector<1x32xf32>
      %67 = arith.mulf %64, %66 : vector<1x32xf32>
      %c0_42 = arith.constant 0 : index
      %c0_43 = arith.constant 0 : index
      %c0_44 = arith.constant 0 : index
      %68 = vector.load %arg7[%c0_42, %c0_43, %c0_44] : memref<1x1x32xf32, #tpu.memory_space<vmem>>, vector<1x1x32xf32>
      %69 = vector.shape_cast %68 : vector<1x1x32xf32> to vector<1x32xf32>
      %70 = arith.mulf %54, %67 : vector<1x32xf32>
      %71 = arith.subf %69, %70 : vector<1x32xf32>
      %c0_45 = arith.constant 0 : index
      %c0_46 = arith.constant 0 : index
      %72 = vector.load %arg15[%c0_45, %c0_46] : memref<1x32xf32, #tpu.memory_space<vmem>>, vector<1x32xf32>
      tpu.vector_store %arg15[%c0_45, %c0_46], %67 {strides = array<i32>} : memref<1x32xf32, #tpu.memory_space<vmem>>, vector<1x32xf32>,
      %c0_47 = arith.constant 0 : index
      %c0_48 = arith.constant 0 : index
      %73 = vector.load %arg16[%c0_47, %c0_48] : memref<1x32xf32, #tpu.memory_space<vmem>>, vector<1x32xf32>
      tpu.vector_store %arg16[%c0_47, %c0_48], %71 {strides = array<i32>} : memref<1x32xf32, #tpu.memory_space<vmem>>, vector<1x32xf32>,
      %cst_49 = arith.constant 0.000000e+00 : f32
      %74 = vector.broadcast %cst_49 : f32 to vector<1x32xf32>
      %c0_50 = arith.constant 0 : index
      %c0_51 = arith.constant 0 : index
      %75 = vector.load %arg17[%c0_50, %c0_51] : memref<1x32xf32, #tpu.memory_space<vmem>>, vector<1x32xf32>
      tpu.vector_store %arg17[%c0_50, %c0_51], %74 {strides = array<i32>} : memref<1x32xf32, #tpu.memory_space<vmem>>, vector<1x32xf32>,
      %cst_52 = arith.constant 0.000000e+00 : f32
      %76 = vector.broadcast %cst_52 : f32 to vector<1x32xf32>
      %c0_53 = arith.constant 0 : index
      %c0_54 = arith.constant 0 : index
      %77 = vector.load %arg18[%c0_53, %c0_54] : memref<1x32xf32, #tpu.memory_space<vmem>>, vector<1x32xf32>
      tpu.vector_store %arg18[%c0_53, %c0_54], %76 {strides = array<i32>} : memref<1x32xf32, #tpu.memory_space<vmem>>, vector<1x32xf32>,
      %c0_i32_55 = arith.constant 0 : i32
      %c1_i32_56 = arith.constant 1 : i32
      %78 = arith.muli %c0_i32_55, %c1_i32_56 : i32
      %c0_i32_57 = arith.constant 0 : i32
      %79 = arith.addi %c0_i32_57, %78 : i32
      %c16_i32_58 = arith.constant 16 : i32
      %80 = arith.muli %79, %c16_i32_58 : i32
      %81 = tpu.assume_multiple %80, 16 : i32
      %82 = arith.index_cast %81 : i32 to index
      %c0_59 = arith.constant 0 : index
      %83 = vector.load %arg13[%82, %c0_59] : memref<16x32xf32, #tpu.memory_space<vmem>>, vector<16x32xf32>
      %84 = vector.broadcast %67 : vector<1x32xf32> to vector<16x32xf32>
      %85 = arith.mulf %83, %84 : vector<16x32xf32>
      %86 = vector.broadcast %71 : vector<1x32xf32> to vector<16x32xf32>
      %87 = arith.addf %85, %86 : vector<16x32xf32>
      %cst_60 = arith.constant 0.000000e+00 : f32
      %88 = vector.broadcast %cst_60 : f32 to vector<16x32xf32>
      %89 = arith.maximumf %87, %88 : vector<16x32xf32>
      %cst_61 = arith.constant 1.000000e-07 : f32
      %90 = vector.broadcast %cst_61 : f32 to vector<16x32xf32>
      %91 = arith.addf %89, %90 : vector<16x32xf32>
      %cst_62 = arith.constant 1.000000e+00 : f32
      %92 = vector.broadcast %cst_62 : f32 to vector<16x32xf32>
      %93 = arith.mulf %92, %91 : vector<16x32xf32>
      %94 = math.exp %93 : vector<16x32xf32>
      %95 = arith.mulf %94, %91 : vector<16x32xf32>
      %96 = arith.truncf %95 : vector<16x32xf32> to vector<16x32xbf16>
      %97 = arith.index_cast %81 : i32 to index
      %c0_63 = arith.constant 0 : index
      %98 = vector.load %arg14[%97, %c0_63] : memref<16x64xbf16, #tpu.memory_space<vmem>>, vector<16x32xbf16>
      tpu.vector_store %arg14[%97, %c0_63], %96 {strides = array<i32>} : memref<16x64xbf16, #tpu.memory_space<vmem>>, vector<16x32xbf16>,
      %99 = arith.truncf %94 : vector<16x32xf32> to vector<16x32xbf16>
      %100 = arith.index_cast %81 : i32 to index
      %c32 = arith.constant 32 : index
      %101 = vector.load %arg14[%100, %c32] : memref<16x64xbf16, #tpu.memory_space<vmem>>, vector<16x32xbf16>
      tpu.vector_store %arg14[%100, %c32], %99 {strides = array<i32>} : memref<16x64xbf16, #tpu.memory_space<vmem>>, vector<16x32xbf16>,
      %c1_i32_64 = arith.constant 1 : i32
    } else {
    }
    %c16_i32 = arith.constant 16 : i32
    %8 = arith.muli %arg1, %c16_i32 : i32
    %9 = tpu.assume_multiple %8, 16 : i32
    %10 = arith.index_cast %9 : i32 to index
    %c0 = arith.constant 0 : index
    %11 = vector.load %arg13[%10, %c0] : memref<16x32xf32, #tpu.memory_space<vmem>>, vector<16x32xf32>
    %c0_4 = arith.constant 0 : index
    %c0_5 = arith.constant 0 : index
    %12 = vector.load %arg15[%c0_4, %c0_5] : memref<1x32xf32, #tpu.memory_space<vmem>>, vector<1x32xf32>
    %13 = vector.broadcast %12 : vector<1x32xf32> to vector<16x32xf32>
    %14 = arith.mulf %11, %13 : vector<16x32xf32>
    %c0_6 = arith.constant 0 : index
    %c0_7 = arith.constant 0 : index
    %15 = vector.load %arg16[%c0_6, %c0_7] : memref<1x32xf32, #tpu.memory_space<vmem>>, vector<1x32xf32>
    %16 = vector.broadcast %15 : vector<1x32xf32> to vector<16x32xf32>
    %17 = arith.addf %14, %16 : vector<16x32xf32>
    %cst = arith.constant 0.000000e+00 : f32
    %18 = vector.broadcast %cst : f32 to vector<16x32xf32>
    %19 = arith.maximumf %17, %18 : vector<16x32xf32>
    %c0_8 = arith.constant 0 : index
    %c0_9 = arith.constant 0 : index
    %20 = vector.load %arg3[%c0_8, %c0_9] : memref<16x16xbf16, #tpu.memory_space<vmem>>, vector<16x16xbf16>
    %c0_10 = arith.constant 0 : index
    %c0_11 = arith.constant 0 : index
    %21 = vector.load %arg14[%c0_10, %c0_11] : memref<16x64xbf16, #tpu.memory_space<vmem>>, vector<16x64xbf16>
    %cst_12 = arith.constant dense<0.000000e+00> : vector<16x64xf32>
    %22 = tpu.matmul %20, %21, %cst_12 {dimension_numbers = #tpu.dot_dimension_numbers<[1], [0], [0], [1], [0, 0, 1, 1], [], []>} : vector<16x16xbf16>, vector<16x64xbf16>, vector<16x64xf32> -> vector<16x64xf32>
    %23 = vector.extract_strided_slice %22 {offsets = [0, 0], sizes = [16, 32], strides = [1, 1]} : vector<16x64xf32> to vector<16x32xf32>
    %24 = vector.extract_strided_slice %22 {offsets = [0, 32], sizes = [16, 32], strides = [1, 1]} : vector<16x64xf32> to vector<16x32xf32>
    %25 = tpu.reciprocal %24 {approx = true} : vector<16x32xf32> -> vector<16x32xf32>
    %cst_13 = arith.constant 0.000000e+00 : f32
    %26 = vector.broadcast %cst_13 : f32 to vector<16x32xf32>
    %27 = arith.cmpf ogt, %24, %26 : vector<16x32xf32>
    %28 = arith.mulf %23, %25 : vector<16x32xf32>
    %cst_14 = arith.constant 0.000000e+00 : f32
    %29 = vector.broadcast %cst_14 : f32 to vector<16x32xf32>
    %30 = arith.select %27, %28, %29 : vector<16x32xi1>, vector<16x32xf32>
    %31 = arith.addf %19, %30 : vector<16x32xf32>
    %c0_15 = arith.constant 0 : index
    %c0_16 = arith.constant 0 : index
    %c0_17 = arith.constant 0 : index
    %32 = vector.load %arg8[%c0_15, %c0_16, %c0_17] : memref<1x32x32xf32, #tpu.memory_space<vmem>>, vector<1x32x32xf32>
    %33 = vector.shape_cast %32 : vector<1x32x32xf32> to vector<32x32xf32>
    %cst_18 = arith.constant dense<0.000000e+00> : vector<16x32xf32>
    %34 = tpu.matmul %31, %33, %cst_18 {dimension_numbers = #tpu.dot_dimension_numbers<[1], [0], [0], [1], [0, 0, 1, 1], [], []>} : vector<16x32xf32>, vector<32x32xf32>, vector<16x32xf32> -> vector<16x32xf32>
    %c0_19 = arith.constant 0 : index
    %c0_20 = arith.constant 0 : index
    %c0_21 = arith.constant 0 : index
    %35 = vector.load %arg9[%c0_19, %c0_20, %c0_21] : memref<1x1x32xf32, #tpu.memory_space<vmem>>, vector<1x1x32xf32>
    %36 = vector.shape_cast %35 : vector<1x1x32xf32> to vector<1x32xf32>
    %37 = vector.broadcast %36 : vector<1x32xf32> to vector<16x32xf32>
    %38 = arith.addf %34, %37 : vector<16x32xf32>
    %39 = arith.addf %38, %11 : vector<16x32xf32>
    %40 = arith.index_cast %9 : i32 to index
    %c0_22 = arith.constant 0 : index
    %41 = vector.load %arg13[%40, %c0_22] : memref<16x32xf32, #tpu.memory_space<vmem>>, vector<16x32xf32>
    tpu.vector_store %arg13[%40, %c0_22], %39 {strides = array<i32>} : memref<16x32xf32, #tpu.memory_space<vmem>>, vector<16x32xf32>,
    %c1_i32 = arith.constant 1 : i32
    %42 = arith.addi %arg0, %c1_i32 : i32
    %c2_i32 = arith.constant 2 : i32
    %43 = arith.cmpi slt, %42, %c2_i32 : i32
    %44 = arith.extui %43 : i1 to i32
    %c0_i32_23 = arith.constant 0 : i32
    %45 = arith.cmpi ne, %44, %c0_i32_23 : i32
    scf.if %45 {
      %52 = tpu.iota {dimensions = array<i32: 0>} : vector<16x1xi32>
      %53 = vector.broadcast %9 : i32 to vector<16x1xi32>
      %54 = arith.addi %52, %53 : vector<16x1xi32>
      %c16_i32_31 = arith.constant 16 : i32
      %55 = vector.broadcast %c16_i32_31 : i32 to vector<16x1xi32>
      %56 = arith.cmpi slt, %54, %55 : vector<16x1xi32>
      %cst_32 = arith.constant 0.000000e+00 : f32
      %57 = vector.shape_cast %56 : vector<16x1xi1> to vector<16x1xi1>
      %58 = vector.broadcast %57 : vector<16x1xi1> to vector<16x32xi1>
      %59 = vector.broadcast %cst_32 : f32 to vector<16x32xf32>
      %60 = arith.select %58, %39, %59 : vector<16x32xi1>, vector<16x32xf32>
      %c0_33 = arith.constant 0 : index
      %c0_34 = arith.constant 0 : index
      %61 = vector.load %arg17[%c0_33, %c0_34] : memref<1x32xf32, #tpu.memory_space<vmem>>, vector<1x32xf32>
      %cst_35 = arith.constant dense<0.000000e+00> : vector<32xf32>
      %62 = vector.multi_reduction <add>, %60, %cst_35 [0] : vector<16x32xf32> to vector<32xf32>
      %63 = vector.shape_cast %62 : vector<32xf32> to vector<1x32xf32>
      %64 = arith.addf %61, %63 : vector<1x32xf32>
      %c0_36 = arith.constant 0 : index
      %c0_37 = arith.constant 0 : index
      %65 = vector.load %arg17[%c0_36, %c0_37] : memref<1x32xf32, #tpu.memory_space<vmem>>, vector<1x32xf32>
      tpu.vector_store %arg17[%c0_36, %c0_37], %64 {strides = array<i32>} : memref<1x32xf32, #tpu.memory_space<vmem>>, vector<1x32xf32>,
      %c0_38 = arith.constant 0 : index
      %c0_39 = arith.constant 0 : index
      %66 = vector.load %arg18[%c0_38, %c0_39] : memref<1x32xf32, #tpu.memory_space<vmem>>, vector<1x32xf32>
      %67 = arith.mulf %60, %60 : vector<16x32xf32>
      %cst_40 = arith.constant dense<0.000000e+00> : vector<32xf32>
      %68 = vector.multi_reduction <add>, %67, %cst_40 [0] : vector<16x32xf32> to vector<32xf32>
      %69 = vector.shape_cast %68 : vector<32xf32> to vector<1x32xf32>
      %70 = arith.addf %66, %69 : vector<1x32xf32>
      %c0_41 = arith.constant 0 : index
      %c0_42 = arith.constant 0 : index
      %71 = vector.load %arg18[%c0_41, %c0_42] : memref<1x32xf32, #tpu.memory_space<vmem>>, vector<1x32xf32>
      tpu.vector_store %arg18[%c0_41, %c0_42], %70 {strides = array<i32>} : memref<1x32xf32, #tpu.memory_space<vmem>>, vector<1x32xf32>,
    } else {
    }
    %c0_24 = arith.constant 0 : index
    %c0_25 = arith.constant 0 : index
    %46 = vector.load %arg10[%c0_24, %c0_25] : memref<32x128xf32, #tpu.memory_space<vmem>>, vector<32x128xf32>
    %cst_26 = arith.constant dense<0.000000e+00> : vector<16x128xf32>
    %47 = tpu.matmul %39, %46, %cst_26 {dimension_numbers = #tpu.dot_dimension_numbers<[1], [0], [0], [1], [0, 0, 1, 1], [], []>} : vector<16x32xf32>, vector<32x128xf32>, vector<16x128xf32> -> vector<16x128xf32>
    %c0_27 = arith.constant 0 : index
    %c0_28 = arith.constant 0 : index
    %48 = vector.load %arg11[%c0_27, %c0_28] : memref<1x128xf32, #tpu.memory_space<vmem>>, vector<1x128xf32>
    %49 = vector.broadcast %48 : vector<1x128xf32> to vector<16x128xf32>
    %50 = arith.addf %47, %49 : vector<16x128xf32>
    %c0_29 = arith.constant 0 : index
    %c0_30 = arith.constant 0 : index
    %51 = vector.load %arg12[%c0_29, %c0_30] : memref<16x128xf32, #tpu.memory_space<vmem>>, vector<16x128xf32>
    tpu.vector_store %arg12[%c0_29, %c0_30], %50 {strides = array<i32>} : memref<16x128xf32, #tpu.memory_space<vmem>>, vector<16x128xf32>,
    return
  }
  func.func @transform_0(%arg0: i32, %arg1: i32) -> (i32, i32) {
    %c0_i32 = arith.constant 0 : i32
    %c0_i32_0 = arith.constant 0 : i32
    %c0_i32_1 = arith.constant 0 : i32
    return %c0_i32, %c0_i32_0 : i32, i32
  }
  func.func @transform_1(%arg0: i32, %arg1: i32) -> (i32, i32) {
    %c0_i32 = arith.constant 0 : i32
    %c0_i32_0 = arith.constant 0 : i32
    return %arg1, %c0_i32 : i32, i32
  }
  func.func @transform_2(%arg0: i32, %arg1: i32) -> (i32, i32) {
    %c0_i32 = arith.constant 0 : i32
    %c0_i32_0 = arith.constant 0 : i32
    %c0_i32_1 = arith.constant 0 : i32
    return %c0_i32, %c0_i32_0 : i32, i32
  }
  func.func @transform_3(%arg0: i32, %arg1: i32) -> (i32, i32) {
    %c0_i32 = arith.constant 0 : i32
    %c0_i32_0 = arith.constant 0 : i32
    %c0_i32_1 = arith.constant 0 : i32
    return %c0_i32, %c0_i32_0 : i32, i32
  }
  func.func @transform_4(%arg0: i32, %arg1: i32) -> (i32, i32, i32) {
    %c0_i32 = arith.constant 0 : i32
    %c0_i32_0 = arith.constant 0 : i32
    %c0_i32_1 = arith.constant 0 : i32
    return %arg0, %c0_i32, %c0_i32_0 : i32, i32, i32
  }
  func.func @transform_5(%arg0: i32, %arg1: i32) -> (i32, i32, i32) {
    %c0_i32 = arith.constant 0 : i32
    %c0_i32_0 = arith.constant 0 : i32
    %c0_i32_1 = arith.constant 0 : i32
    return %arg0, %c0_i32, %c0_i32_0 : i32, i32, i32
  }
  func.func @transform_6(%arg0: i32, %arg1: i32) -> (i32, i32, i32) {
    %c0_i32 = arith.constant 0 : i32
    %c0_i32_0 = arith.constant 0 : i32
    %c0_i32_1 = arith.constant 0 : i32
    return %arg0, %c0_i32, %c0_i32_0 : i32, i32, i32
  }
  func.func @transform_7(%arg0: i32, %arg1: i32) -> (i32, i32, i32) {
    %c0_i32 = arith.constant 0 : i32
    %c0_i32_0 = arith.constant 0 : i32
    %c0_i32_1 = arith.constant 0 : i32
    return %arg0, %c0_i32, %c0_i32_0 : i32, i32, i32
  }
  func.func @transform_8(%arg0: i32, %arg1: i32) -> (i32, i32) {
    %c0_i32 = arith.constant 0 : i32
    %c0_i32_0 = arith.constant 0 : i32
    %c0_i32_1 = arith.constant 0 : i32
    return %c0_i32, %c0_i32_0 : i32, i32
  }
  func.func @transform_9(%arg0: i32, %arg1: i32) -> (i32, i32) {
    %c0_i32 = arith.constant 0 : i32
    %c0_i32_0 = arith.constant 0 : i32
    %c0_i32_1 = arith.constant 0 : i32
    return %c0_i32, %c0_i32_0 : i32, i32
  }
  func.func @transform_10(%arg0: i32, %arg1: i32) -> (i32, i32) {
    %c0_i32 = arith.constant 0 : i32
    %c0_i32_0 = arith.constant 0 : i32
    return %arg1, %c0_i32 : i32, i32
  }
}

</mosaic_0001>

<bundles_post_ra>
// kernel: tpu_custom_call.1
= control target key start
LH: loop header
LB: loop body
LE: loop exit
PB: predicated region body
PF: predicated region fallthrough
CT: control target
= control target key end

     0   :  { %s1523_s0 = inlined_call_operand.vmem [shape: f32[16,8], index: 0, kind: input, shape index: {}]   ;;  %s1524_s1 = inlined_call_operand.vmem [shape: bf16[16,16], index: 1, kind: input, shape index: {}]   ;;  %s1525_s2 = inlined_call_operand.vmem [shape: f32[8,32], index: 2, kind: input, shape index: {}]   ;;  %s1526_s3 = inlined_call_operand.vmem [shape: f32[1,32], index: 3, kind: input, shape index: {}]   ;;  %s1527_s4 = inlined_call_operand.vmem [shape: f32[2,1,32], index: 4, kind: input, shape index: {}]   ;;  %s1528_s5 = inlined_call_operand.vmem [shape: f32[2,1,32], index: 5, kind: input, shape index: {}]   ;;  %s1529_s6 = inlined_call_operand.hbm [shape: f32[2,32,32], index: 6, kind: input, shape index: {}]   ;;  %s1530_s7 = inlined_call_operand.vmem [shape: f32[2,1,32], index: 7, kind: input, shape index: {}]   ;;  %s1531_s8 = inlined_call_operand.hbm [shape: f32[32,128], index: 8, kind: input, shape index: {}]   ;;  %s1532_s9 = inlined_call_operand.vmem [shape: f32[1,128], index: 9, kind: input, shape index: {}]   ;;  %s1533_s10 = inlined_call_operand.hbm [shape: f32[16,128], index: 10, kind: output, shape index: {}]  }
   0x1   :  { %1537 = sst [smem:[#allocation19_spill]] %s1524_s1 }
   0x2   :  { %1538 = sst [smem:[#allocation20_spill]] %s1526_s3 }
   0x3   :  { %1539 = sst [smem:[#allocation21_spill]] %s1531_s8 }
   0x4   :  { %1540 = sst [smem:[#allocation22_spill]] %s1532_s9 }
   0x5   :  { %1541 = sst [smem:[#allocation23_spill]] %s1533_s10 }
   0x6   :  { %15 = vsyncpa [#allocation9], 0 }
   0x7   :  { %17 = vsyncpa [#allocation9 + $0x1], 0 }
   0x8   :  { %18 = vsyncpa [#allocation12], 0 }
   0x9   :  { %19 = vsyncpa [#allocation10], 0  ;;  %s1319_s13 = smov 0   ;;  %s1321_s14 = smov 0  }
   0xa   :  { %s1323_s15 = smov 0   ;;  %s1325_s16 = smov 0  }
   0xb   :  { %s1327_s17 = smov 0   ;;  %s1329_s18 = smov 0  }
   0xc LB: > { %1542 = sst [smem:[#allocation17_spill]] %s1248_s17  ;;  %s1534_s19 = sadd.s32 4294967295, %s1252_s18   ;;  %s1252_s18 = sphi %s1329_s18, %s25_s18   ;;  %s1248_s17 = sphi %s1327_s17, %s1555_s17   ;;  %s1244_s16 = sphi %s1325_s16, %s1554_s16   ;;  %s1240_s15 = sphi %s1323_s15, %s1558_s15   ;;  %s1236_s14 = sphi %s1321_s14, %s1557_s14   ;;  %s1232_s13 = sphi %s1319_s13, %s1556_s13  }
   0xd   : > { %p198_p0 = scmp.ne.s32.totalorder %s1236_s14, %s1232_s13  ;;  %p1351_p1 = scmp.eq.s32.totalorder %s1534_s19, 0 }
   0xe   : > { %p970_p2 = scmp.ge.s32.totalorder %s1252_s18, 1  ;;  %p303_p3 = scmp.lt.s32.totalorder %s1252_s18, 3 }
   0xf   : > { %p1359_p4 = por %p1351_p1, %p198_p0  ;;  %s1545_s8 = sld [smem:[#allocation21_spill]] }
  0x10   : > { %p1366_p5 = pnand %p970_p2, %p303_p3  ;;  %s1254_s26 = smov [#allocation11]  }
  0x11   : > { %s334_s27 = sshll.u32 %s1254_s26, 4  ;;  %s1255_s28 = smov 128   ;;  %s335_s27 = int_to_ptr.vmem [resolvable:$true] %s334_s27 }
  0x12   : > { %p1020_p6 = pneg %p1366_p5  ;;  %s1256_s29 = smov 8  }
  0x13   : > { %s37_s30 = sadd.s32 1, %s1248_s17  ;;  %p192_p9 = scmp.ne.s32.totalorder %s1240_s15, %s1236_s14 }
  0x14   : > { %p1021_p7 = pnand %p1020_p6, %p1351_p1  ;;  %p39_p8 = scmp.ge.s32.totalorder %s37_s30, 2 }
  0x15   : > { %s332_s24 = sshll.u32 %s1545_s8, 4  ;;  %p193_p10 = scmp.eq.s32.totalorder %s1252_s18, 0  ;;  %s333_s24 = int_to_ptr.hbm [resolvable:$true] %s332_s24 }
  0x16   : > { %1023 = dma.hbm_to_vmem [thread:$0]  (!%p1021_p7), %s333_s24, 512, %s335_s27, [#allocation12], %s1255_s28, %s1255_s28, %s1256_s29  }
  0x17   : > { %s1560_s30 = smov (%p39_p8, %s37_s30), 0  ;;  %s185_s11 = sadd.s32 1, %s1240_s15 }
  0x18   : > { %1547 = sst [smem:[#allocation18_spill]] %s1560_s30  ;;  %p1381_p11 = por %p193_p10, %p192_p9 }
  0x19   : > { %s182_s13 = ssub.s32 %s1248_s17, %s1560_s30  ;;  %s363_s22 = sand.u32 1, %s1240_s15  }
  0x1a   : > { %p183_p12 = scmp.eq.s32.totalorder %s182_s13, 0  ;;  %p1029_p13 = scmp.lt.s32.totalorder %s1252_s18, 2 }
  0x1b   : > { %s974_s23 = sshll.u32 %s363_s22, 5  ;;  %s1001_s26 = sshll.u32 %s1248_s17, 5 }
  0x1c   : > { %s1391_s24 = scalar_select %p183_p12, %s1240_s15, %s185_s11  }
  0x1d   : > { %s372_s8 = scalar_lea.hbm %s1529_s6, %s1001_s26  ;;  %s367_s9 = scalar_lea.vmem [#allocation8], %s974_s23 }
  0x1e   : > { %s373_s10 = sshll.u32 %s372_s8, 4  ;;  %s375_s1 = sshll.u32 %s367_s9, 4  ;;  %s374_s10 = int_to_ptr.hbm [resolvable:$true] %s373_s10  ;;  %s376_s1 = int_to_ptr.vmem [resolvable:$true] %s375_s1 }
  0x1f   : > { %p1025_p0 = pnand %p1029_p13, %p1381_p11  ;;  %s364_s3 = scalar_lea.sflag [#allocation9], %s363_s22 }
  0x20   : > { %393 = sbr.rel (%p1366_p5) target bundleno = 1163 (0x48b), region = 60  ;;  %s395_s11 = sand.u32 (!%p1366_p5), 1, %s1236_s14  }
  0x21   : > { %1027 = dma.hbm_to_vmem [thread:$0]  (!%p1025_p0), %s374_s10, 512, %s376_s1, %s364_s3, %s1255_s28, %s1255_s28, %s1256_s29  }
  0x22   : > { %s978_s13 = sshll.u32 (!%p1366_p5), %s395_s11, 5  ;;  %s396_s30 = scalar_lea.sflag (!%p1366_p5), [#allocation9], %s395_s11 }
  0x23   : > { %s1401_s17 = scalar_lea.vmem (!%p1366_p5), [#allocation8], %s978_s13 }
  0x25   : > { %1219 = dma.done.wait (%p1359_p4), %s396_s30, 512  }
  0x26   : > { %1221 = vsyncadd (%p1359_p4), %s396_s30, 4294966784 }
  0x27   : > { %1223 = dma.done.wait (%p1351_p1), [#allocation12], 512  }
  0x28   : > { %1225 = vsyncadd (%p1351_p1), [#allocation12], 4294966784  ;;  %p457_p2 = scmp.lt.s32.totalorder %s1244_s16, 1  ;;  %p468_p3 = scmp.eq.s32.totalorder %s1244_s16, 0 }
  0x29   : > { %v479_v0 = vld [vmem:[%s1525_s2] sm:$0xff] (%p468_p3)  ;;  %vm484_vm0 = vcmask (%p468_p3), 64512   ;;  %v478_v2 = vld [vmem:[%s1523_s0 + $0x8] sm:$0xff] (%p468_p3)  ;;  %vm474_vm1 = vcmask (%p468_p3), 253952   ;;  %v1257_v3 = vmov (%p468_p3), 0.0   ;;  %s1549_s13 = sld [smem:[#allocation20_spill]] (%p468_p3) }
  0x2a   : > { %s1414_s1 = scalar_select %p457_p2, %s1244_s16, 1  ;;  %v477_v1 = vld [vmem:[%s1523_s0] sm:$0xff] (%p468_p3)  ;;  %506 = vmatpush.msra.mxu0 (%p468_p3), %v479_v0  ;;  %1005 = vmatpush.msra.mxu1 (%p468_p3), %v479_v0  ;;  %475 = vst.msk [vmem:[#allocation6] sm:$0x1] (%p468_p3), %vm474_vm1, %v1257_v3  ;;  %vm514_vm2 = vcmask (%p468_p3), 261120  }
  0x2b   : > { %473 = sbr.rel (!%p468_p3) target bundleno = 191 (0xbf), region = 72  ;;  %981 = vmatmul.msk.f32.vlgmr.msra.gmra.mxu0 (%p468_p3), %vm484_vm0, %v477_v1  ;;  %982 = vmatmul.msk.f32.vlgmr.msra.gmra.mxu1 (%p468_p3), %vm484_vm0, %v478_v2  ;;  %476 = vst.msk [vmem:[#allocation7] sm:$0x1] (%p468_p3), %vm474_vm1, %v1257_v3 }
  0x2c   : > { %s459_s9 = scalar_lea.vmem %s1527_s4, %s1414_s1  ;;  %s462_s21 = scalar_lea.vmem %s1528_s5, %s1414_s1 }
  0x2d   : > { %s465_s28 = scalar_lea.vmem %s1530_s7, %s1414_s1 }
  0x2f   : > { %v1091_v4 = vld [vmem:[%s1549_s13] ss:$0 sm:$0xff] (%p468_p3) }
  0x31   : > { %v531_v26 = vld [vmem:[#allocation6] sm:$0x1] }
  0x32   : > { %v543_v29 = vld [vmem:[#allocation7] sm:$0x1] }
  0xa8   : > { %v508_v5 = vpop.f32.mrf.mxu0  ;;  %v511_v6 = vpop.f32.mrf.mxu1 }
  0xa9   : > { %v509_v7 = vadd.f32 %v1091_v4, %v508_v5  ;;  %v512_v8 = vadd.f32 %v1091_v4, %v511_v6 }
  0xab   : > { %515 = vst.msk [vmem:[#allocation2] sm:$0xff] %vm514_vm2, %v509_v7  ;;  %v532_v9 = vsel %vm514_vm2, %v509_v7, 0.0  ;;  %v544_v10 = vmul.f32 %v509_v7, %v509_v7  ;;  %v533_v11 = vsel %vm514_vm2, %v512_v8, 0.0  ;;  %v545_v12 = vmul.f32 %v512_v8, %v512_v8 }
  0xac   : > { %516 = vst.msk [vmem:[#allocation2 + $0x8] sm:$0xff] %vm514_vm2, %v512_v8  ;;  %v534_v13 = vadd.f32 %v533_v11, %v532_v9 }
  0xad   : > { %v546_v14 = vsel %vm514_vm2, %v544_v10, 0.0  ;;  %v547_v15 = vsel %vm514_vm2, %v545_v12, 0.0 }
  0xae   : > { %v535_v16 = vrot.slane %v534_v13, 4  ;;  %v548_v17 = vadd.f32 %v547_v15, %v546_v14 }
  0xb0   : > { %v536_v18 = vadd.f32 %v535_v16, %v534_v13  ;;  %v549_v19 = vrot.slane %v548_v17, 4 }
  0xb2   : > { %v537_v20 = vrot.slane %v536_v18, 2  ;;  %v550_v21 = vadd.f32 %v549_v19, %v548_v17 }
  0xb4   : > { %v538_v22 = vadd.f32 %v537_v20, %v536_v18  ;;  %v551_v23 = vrot.slane %v550_v21, 2 }
  0xb6   : > { %v539_v24 = vrot.slane %v538_v22, 1  ;;  %v552_v25 = vadd.f32 %v551_v23, %v550_v21 }
  0xb8   : > { %v540_v27 = vadd.f32 %v539_v24, %v538_v22  ;;  %v553_v28 = vrot.slane %v552_v25, 1 }
  0xba   : > { %v541_v30 = vadd.f32 %v540_v27, %v531_v26  ;;  %v554_v31 = vadd.f32 %v553_v28, %v552_v25 }
  0xbc   : > { %542 = vst.msk [vmem:[#allocation6] sm:$0x1] %vm474_vm1, %v541_v30  ;;  %v555_v32 = vadd.f32 %v554_v31, %v543_v29 }
  0xbe   : > { %556 = vst.msk [vmem:[#allocation7] sm:$0x1] %vm474_vm1, %v555_v32 }
  0xbf PF: > { %vm583_vm3 = vcmask 253952   ;;  %v1258_v37 = vmov 0.0   ;;  %v578_v48 = vld [vmem:[%s459_s9] sm:$0x1]  ;;  %v1458_v53 = vld [vmem:[#allocation2 + $0x8] sm:$0xff]  ;;  %s1259_s9 = smov 32  }
  0xc0   : > { %v580_v51 = vld [vmem:[%s462_s21] sm:$0x1]  ;;  %vm612_vm7 = vcmask 257024   ;;  %vm625_vm8 = vcmask 519424   ;;  %s1550_s25 = sld [smem:[#allocation19_spill]]  ;;  %vm661_vm9 = vcmask 130048  }
  0xc1   : > { %v1456_v52 = vld [vmem:[#allocation2] sm:$0xff]  ;;  %s1260_s29 = smov 96   ;;  %v716_v24 = vld [vmem:[%s1401_s17 + $0x18] sm:$0xff]  ;;  %v715_v25 = vld [vmem:[%s1401_s17 + $0x10] sm:$0xff]  ;;  %vm721_vm12 = vcmask 261120  }
  0xc2   : > { %1006 = vmatpush.msra.mxu3 %v716_v24  ;;  %740 = vmatpush.msra.mxu1 %v716_v24  ;;  %v714_v26 = vld [vmem:[%s1401_s17 + $0x8] sm:$0xff]  ;;  %v713_v31 = vld [vmem:[%s1401_s17] sm:$0xff]  ;;  %s755_s17 = sadd.s32 1, %s1244_s16 }
  0xc3   : > { %v560_v33 = vld [vmem:[#allocation6] sm:$0x1]  ;;  %p994_p1 = scmp.ge.s32.totalorder %s755_s17, 2 }
  0xc4   : > { %v561_v35 = vmul.f32 0.0625, %v560_v33  ;;  %586 = vst.msk [vmem:[#allocation6] sm:$0x1] %vm583_vm3, %v1258_v37  ;;  %1007 = vmatpush.msra.mxu3 %v715_v25  ;;  %741 = vmatpush.msra.mxu1 %v715_v25 }
  0xc5   : > { %v562_v34 = vld [vmem:[#allocation7] sm:$0x1] }
  0xc6   : > { %v563_v36 = vmul.f32 0.0625, %v562_v34  ;;  %v564_v38 = vmul.f32 %v561_v35, %v561_v35  ;;  %587 = vst.msk [vmem:[#allocation7] sm:$0x1] %vm583_vm3, %v1258_v37  ;;  %v1003_v15 = vld [vmem:[%s1550_s25] sm:$0xff]  ;;  %1008 = vmatpush.msra.mxu3 %v714_v26  ;;  %742 = vmatpush.msra.mxu1 %v714_v26 }
  0xc8   : > { %v565_v39 = vsub.f32 %v563_v36, %v564_v38  ;;  %1009 = vmatpush.msra.mxu3 %v713_v31  ;;  %743 = vmatpush.msra.mxu1 %v713_v31 }
  0xca   : > { %v566_v40 = vmax.f32 %v565_v39, 0.0 }
  0xcc   : > { %v567_v41 = vadd.f32 1e-05, %v566_v40 }
  0xce   : > { %1095 = vrsqrt.f32 %v567_v41  ;;  %vm574_vm4 = vweird.f32 %v567_v41 }
  0xd4   : > { %v1096_v42 = vpop.eup %1095 }
  0xd5   : > { %v569_v43 = vmul.f32 %v1096_v42, %v567_v41  ;;  %vm575_vm5 = vweird.f32 %v1096_v42 }
  0xd6   : > { %vm576_vm6 = vmor %vm574_vm4, %vm575_vm5 }
  0xd7   : > { %v570_v44 = vmul.f32 %v1096_v42, %v569_v43 }
  0xd9   : > { %v571_v45 = vmul.f32 0.5, %v570_v44  ;;  %v1094_v44 = vld [vmem:[%s465_s28] ss:$0 sm:$0xff] }
  0xdb   : > { %v572_v46 = vsub.f32 1.5, %v571_v45 }
  0xdd   : > { %v573_v47 = vmul.f32 %v1096_v42, %v572_v46 }
  0xdf   : > { %v577_v49 = vsel %vm576_vm6, %v1096_v42, %v573_v47 }
  0xe0   : > { %v579_v50 = vmul.f32 %v578_v48, %v577_v49 }
  0xe2   : > { %v581_v54 = vmul.f32 %v579_v50, %v561_v35  ;;  %584 = vst.msk [vmem:[#allocation4] sm:$0x1] %vm583_vm3, %v579_v50  ;;  %v591_v55 = vperm.slane %v579_v50, 0 }
  0xe4   : > { %v582_v56 = vsub.f32 %v580_v51, %v581_v54  ;;  %v593_v57 = vmul.f32 %v591_v55, %v1456_v52  ;;  %v594_v58 = vmul.f32 %v591_v55, %v1458_v53 }
  0xe6   : > { %v596_v59 = vperm.slane %v582_v56, 0  ;;  %585 = vst.msk [vmem:[#allocation5] sm:$0x1] %vm583_vm3, %v582_v56 }
  0xe8   : > { %v598_v60 = vadd.f32 %v596_v59, %v593_v57  ;;  %v599_v61 = vadd.f32 %v596_v59, %v594_v58 }
  0xe9   : > { %v1092_v32 = vld [vmem:[#allocation4] ss:$0 sm:$0xff] }
  0xea   : > { %v600_v62 = vmax.f32 %v598_v60, 0.0  ;;  %v601_v63 = vmax.f32 %v599_v61, 0.0  ;;  %v637_v33 = vmul.f32 %v1092_v32, %v1458_v53  ;;  %v636_v37 = vmul.f32 %v1092_v32, %v1456_v52 }
  0xec   : > { %v602_v0 = vadd.f32 1e-07, %v600_v62  ;;  %v603_v1 = vadd.f32 1e-07, %v601_v63 }
  0xed   : > { %v1093_v34 = vld [vmem:[#allocation5] ss:$0 sm:$0xff] }
  0xee   : > { %v604_v2 = vmul.f32 1.442695, %v602_v0  ;;  %v606_v3 = vmul.f32 1.442695, %v603_v1  ;;  %v643_v35 = vadd.f32 %v1093_v34, %v637_v33  ;;  %v642_v40 = vadd.f32 %v1093_v34, %v636_v37 }
  0xf0   : > { %1097 = vpow2.f32 %v604_v2  ;;  %v645_v36 = vmax.f32 %v643_v35, 0.0  ;;  %v644_v41 = vmax.f32 %v642_v40, 0.0 }
  0xf1   : > { %1099 = vpow2.f32 %v606_v3 }
  0xf6   : > { %v1098_v4 = vpop.eup %1097 }
  0xf7   : > { %v615_v5 = vpack.c.bf16 %v1098_v4, %v1098_v4  ;;  %v1100_v6 = vpop.eup %1099  ;;  %v608_v8 = vmul.f32 %v1098_v4, %v602_v0 }
  0xf8   : > { %v616_v7 = vpack.c.bf16 %v1100_v6, %v1100_v6  ;;  %v609_v10 = vmul.f32 %v1100_v6, %v603_v1 }
  0xf9   : > { %619 = vrot.lane.b32.xlu0 %v615_v5, %s1259_s9  ;;  %v610_v9 = vpack.c.bf16 %v608_v8, %v608_v8 }
  0xfa   : > { %v611_v11 = vpack.c.bf16 %v609_v10, %v609_v10 }
  0xfb   : > { %613 = vst.msk [vmem:[#allocation3] sm:$0xf] %vm612_vm7, %v610_v9 }
  0xfc   : > { %614 = vst.msk [vmem:[#allocation3 + $0x4] sm:$0xf] %vm612_vm7, %v611_v11 }
 0x101   : > { %621 = vrot.lane.b32.xlu0 %v616_v7, %s1259_s9 }
 0x16b   : > { %v620_v12 = vpop.permute.xlu0 %619 }
 0x16c   : > { %626 = vst.msk [vmem:[#allocation3] sm:$0xf] %vm625_vm8, %v620_v12 }
 0x173   : > { %v622_v13 = vpop.permute.xlu0 %621 }
 0x174   : > { %627 = vst.msk [vmem:[#allocation3 + $0x4] sm:$0xf] %vm625_vm8, %v622_v13 }
 0x17b   : > { %v1004_v14 = vld [vmem:[#allocation3] sm:$0xff] }
 0x17c   : > { %672 = vmatpush.bf16.msra.mxu0 %v1004_v14 }
 0x17f   : > { %991 = vmatmul.msk.bf16.vlgmr.msra.gmra.mxu0 %vm661_vm9, %v1003_v15 }
 0x1fc   : > { %v674_v16 = vpop.f32.mrf.mxu0 }
 0x1fd   : > { %vm681_vm11 = vcmp.gt.f32.partialorder %v674_v16, 0.0 }
 0x204   : > { %v676_v17 = vpop.f32.mrf.mxu0 }
 0x205   : > { %1101 = vrcp.f32 %v676_v17  ;;  %vm682_vm10 = vcmp.gt.f32.partialorder %v676_v17, 0.0 }
 0x206   : > { %1103 = vrcp.f32 %v674_v16 }
 0x20b   : > { %v1102_v18 = vpop.eup %1101 }
 0x20c   : > { %687 = vrot.lane.b32.xlu1 %v1102_v18, %s1260_s29  ;;  %v1104_v19 = vpop.eup %1103 }
 0x214   : > { %685 = vrot.lane.b32.xlu1 %v1104_v19, %s1260_s29 }
 0x27e   : > { %v688_v20 = vpop.permute.xlu1 %687 }
 0x27f   : > { %v692_v21 = vmul.f32 %v688_v20, %v676_v17 }
 0x281   : > { %697 = vrot.lane.b32.xlu2 %v692_v21, %s1259_s9 }
 0x286   : > { %v686_v22 = vpop.permute.xlu1 %685 }
 0x287   : > { %v691_v23 = vmul.f32 %v686_v22, %v674_v16 }
 0x289   : > { %695 = vrot.lane.b32.xlu2 %v691_v23, %s1259_s9 }
 0x2db   : > { %v698_v27 = vpop.permute.xlu2 %697 }
 0x2dc   : > { %v702_v28 = vsel %vm682_vm10, %v698_v27, 0.0 }
 0x2dd   : > { %707 = vrot.lane.b32.xlu0 %v702_v28, %s1260_s29 }
 0x2e3   : > { %v696_v29 = vpop.permute.xlu2 %695 }
 0x2e4   : > { %v701_v30 = vsel %vm681_vm11, %v696_v29, 0.0 }
 0x2e5   : > { %705 = vrot.lane.b32.xlu1 %v701_v30, %s1260_s29 }
 0x34f   : > { %v708_v38 = vpop.permute.xlu0 %707 }
 0x350   : > { %v712_v39 = vadd.f32 %v708_v38, %v645_v36 }
 0x352   : > { %993 = vmatmul.msk.f32.vlgmr.msra.gmra.mxu3 %vm721_vm12, %v712_v39 }
 0x357   : > { %v706_v42 = vpop.permute.xlu1 %705 }
 0x358   : > { %v711_v43 = vadd.f32 %v706_v42, %v644_v41 }
 0x35a   : > { %992 = vmatmul.msk.f32.vlgmr.msra.gmra.mxu1 %vm721_vm12, %v711_v43 }
 0x3d5   : > { %v748_v45 = vpop.f32.mrf.mxu3 }
 0x3d6   : > { %v749_v46 = vadd.f32 %v1094_v44, %v748_v45 }
 0x3d7   : > { %v745_v47 = vpop.f32.mrf.mxu1 }
 0x3d8   : > { %v752_v48 = vadd.f32 %v749_v46, %v1458_v53  ;;  %v746_v49 = vadd.f32 %v1094_v44, %v745_v47  ;;  %759 = sbr.rel (%p994_p1) target bundleno = 1009 (0x3f1), region = 80 }
 0x3da   : > { %754 = vst.msk [vmem:[#allocation2 + $0x8] sm:$0xff] %vm721_vm12, %v752_v48  ;;  %v751_v50 = vadd.f32 %v746_v49, %v1456_v52 }
 0x3dc   : > { %753 = vst.msk [vmem:[#allocation2] sm:$0xff] %vm721_vm12, %v751_v50 }
 0x3dd   : > { %v775_v51 = vsel %vm721_vm12, %v751_v50, 0.0  ;;  %v776_v54 = vsel %vm721_vm12, %v752_v48, 0.0  ;;  %v788_v55 = vmul.f32 %v751_v50, %v751_v50  ;;  %v789_v56 = vmul.f32 %v752_v48, %v752_v48  ;;  %v774_v4 = vld [vmem:[#allocation6] sm:$0x1]  ;;  %v787_v7 = vld [vmem:[#allocation7] sm:$0x1] }
 0x3de   : > { %v777_v57 = vadd.f32 %v776_v54, %v775_v51 }
 0x3df   : > { %v790_v58 = vsel %vm721_vm12, %v788_v55, 0.0  ;;  %v791_v53 = vsel %vm721_vm12, %v789_v56, 0.0 }
 0x3e0   : > { %v778_v59 = vrot.slane %v777_v57, 4  ;;  %v792_v60 = vadd.f32 %v791_v53, %v790_v58 }
 0x3e2   : > { %v779_v61 = vadd.f32 %v778_v59, %v777_v57  ;;  %v793_v62 = vrot.slane %v792_v60, 4 }
 0x3e4   : > { %v780_v52 = vrot.slane %v779_v61, 2  ;;  %v794_v63 = vadd.f32 %v793_v62, %v792_v60 }
 0x3e6   : > { %v781_v0 = vadd.f32 %v780_v52, %v779_v61  ;;  %v795_v1 = vrot.slane %v794_v63, 2 }
 0x3e8   : > { %v782_v2 = vrot.slane %v781_v0, 1  ;;  %v796_v3 = vadd.f32 %v795_v1, %v794_v63 }
 0x3ea   : > { %v783_v5 = vadd.f32 %v782_v2, %v781_v0  ;;  %v797_v6 = vrot.slane %v796_v3, 1 }
 0x3ec   : > { %v784_v8 = vadd.f32 %v783_v5, %v774_v4  ;;  %v798_v9 = vadd.f32 %v797_v6, %v796_v3 }
 0x3ee   : > { %786 = vst.msk [vmem:[#allocation6] sm:$0x1] %vm583_vm3, %v784_v8  ;;  %v799_v10 = vadd.f32 %v798_v9, %v787_v7 }
 0x3f0   : > { %800 = vst.msk [vmem:[#allocation7] sm:$0x1] %vm583_vm3, %v799_v10 }
 0x3f1 PF: > { %v804_v11 = vld [vmem:[#allocation11 + $0x18] sm:$0xff]  ;;  %v803_v12 = vld [vmem:[#allocation11 + $0x10] sm:$0xff]  ;;  %v802_v13 = vld [vmem:[#allocation11 + $0x8] sm:$0xff]  ;;  %s1551_s28 = sld [smem:[#allocation22_spill]]  ;;  %s1261_s22 = smov [#allocation13]  }
 0x3f2   : > { %827 = vmatpush.msra.mxu2 %v804_v11  ;;  %v801_v14 = vld [vmem:[#allocation11] sm:$0xff]  ;;  %s848_s23 = sshll.u32 %s1261_s22, 4  ;;  %s1552_s11 = sld [smem:[#allocation23_spill]]  ;;  %s849_s23 = int_to_ptr.vmem [resolvable:$true] %s848_s23 }
 0x3f3   : > { %s1553_s3 = sadd.s32 4294967295, %s1252_s18   ;;  %s1262_s8 = smov 128  }
 0x3f4   : > { %828 = vmatpush.msra.mxu2 %v803_v12  ;;  %p1031_p4 = scmp.eq.s32.totalorder %s1553_s3, 1  ;;  %s1263_s10 = smov 8  }
 0x3f6   : > { %829 = vmatpush.msra.mxu2 %v802_v13 }
 0x3f7   : > { %v1105_v15 = vld [vmem:[%s1551_s28] ss:$0 sm:$0xff] }
 0x3f8   : > { %830 = vmatpush.msra.mxu2 %v801_v14  ;;  %s850_s13 = sshll.u32 %s1552_s11, 4  ;;  %s851_s13 = int_to_ptr.hbm [resolvable:$true] %s850_s13 }
 0x3f9   : > { %995 = vmatmul.msk.f32.vlgmr.msra.gmra.mxu2 %vm721_vm12, %v751_v50 }
 0x401   : > { %996 = vmatmul.msk.f32.gmra.mxu2 %vm721_vm12, %v752_v48 }
 0x47c   : > { %v832_v16 = vpop.f32.mrf.mxu2 }
 0x47d   : > { %v833_v17 = vadd.f32 %v1105_v15, %v832_v16 }
 0x47f   : > { %838 = vst [vmem:[#allocation13] sm:$0xff] %v833_v17 }
 0x484   : > { %v835_v18 = vpop.f32.mrf.mxu2 }
 0x485   : > { %v836_v19 = vadd.f32 %v1105_v15, %v835_v18 }
 0x487   : > { %839 = vst [vmem:[#allocation13 + $0x8] sm:$0xff] %v836_v19 }
 0x488   : > { %1017 = dma.vmem_to_hbm [thread:$0]  (%p1031_p4), %s849_s23, 256, %s851_s13, [#allocation10], %s1262_s8, %s1262_s8, %s1263_s10  }
 0x489   : > { %1227 = dma.done.wait (%p1031_p4), [#allocation10], 256  }
 0x48a   : > { %1229 = vsyncadd (%p1031_p4), [#allocation10], 4294967040 }
 0x48b PF: > { %s25_s18 = sadd.s32 1, %s1252_s18   ;;  %s1554_s16 = sld [smem:[#allocation17_spill]] }
 0x48c   : > { %p22_p5 = scmp.ge.s32.totalorder %s25_s18, 4   ;;  %s1555_s17 = sld [smem:[#allocation18_spill]] }
 0x48d   : > { %s1556_s13 = smov %s1236_s14  ;;  %s1557_s14 = smov %s1240_s15 }
 0x48e   : > { %s1558_s15 = smov %s1391_s24  ;;  %24 = sbr.rel (!%p22_p5) target bundleno = 12 (0xc), region = 127 }
 0x493   :  { %867 = vsyncpa [#allocation9], 1 }
 0x494   :  { %869 = vsyncpa [#allocation9 + $0x1], 1 }
 0x495   :  { %870 = vsyncpa [#allocation12], 1 }
 0x496   :  { %871 = vsyncpa [#allocation10], 1 }
 0x497   :  { %873 = vsyncpa [#allocation10 + $0x1], 1 }

</bundles_post_ra>
